<compile_context>
chip_gen: v7x
topology: tpu7x:2x2x1
jax: 0.10.0
libtpu: 0.0.40
codegen_flags: <defaults>
</compile_context>

<pallas_src>
import jax
import jax.numpy as jnp
from jax.experimental import pallas as pl
from jax.experimental.pallas import tpu as pltpu

_MB = 1024 * 1024


def _round_up(x, m):
    return ((x + m - 1) // m) * m


def _sublane_multiple(itemsize):
    # (8, 128) native tile for 4-byte dtypes; packed dtypes need 16/32 rows.
    return max(8, 32 // max(int(itemsize), 1))


def _vmem_capacity_bytes():
    try:
        return int(pltpu.get_tpu_info().vmem_capacity_bytes)
    except Exception:
        return 64 * _MB  # conservative fallback: v7x per-TensorCore VMEM


def _vmem_budget_bytes(capacity):
    # Working-set budget for tiling; leave headroom for compiler scratch and
    # pipeline bookkeeping.  v7x (64 MiB) -> 32 MiB, v5e/v6e (128 MiB) -> 48 MiB.
    return max(min(capacity // 2, 48 * _MB), 8 * _MB)


def _vmem_limit_bytes(need, capacity):
    return int(min(max(need * 5 // 4, 16 * _MB), capacity - 8 * _MB))


def _choose_tm(n_rows, fixed_bytes, per_row_bytes, itemsize, budget_bytes,
               tm_max=2048):
    """Row-tile size: as large as the VMEM budget allows, 256-aligned."""
    sub = _sublane_multiple(itemsize)
    n_rows = max(int(n_rows), 1)
    avail = max(budget_bytes - fixed_bytes, per_row_bytes * sub)
    tm_budget = int(avail // max(per_row_bytes, 1))
    tm_budget = max(min(tm_budget, tm_max), sub)
    if n_rows <= tm_budget:
        # Whole row axis in one full-dim block: no masking, no alignment rules.
        return n_rows
    if tm_budget >= 256:
        return (tm_budget // 256) * 256   # MXU feed depth, bf16-safe sublanes
    return max((tm_budget // sub) * sub, sub)


def _linear_kernel(x_ref, w_ref, b_ref, o_ref):
    # x_ref: (TM, F_in), w_ref: (F_in, F_out), b_ref: (1, F_out)
    acc = jnp.dot(x_ref[...], w_ref[...], preferred_element_type=jnp.float32)
    o_ref[...] = (acc + b_ref[...].astype(jnp.float32)).astype(o_ref.dtype)


def _linear_kernel_ktiled(x_ref, w_ref, b_ref, o_ref, acc_ref):
    # Grid = (row_tiles, k_tiles); accumulate partial products over k.
    k = pl.program_id(1)

    @pl.when(k == 0)
    def _():
        acc_ref[...] = jnp.zeros_like(acc_ref)

    acc_ref[...] += jnp.dot(x_ref[...], w_ref[...],
                            preferred_element_type=jnp.float32)

    @pl.when(k == pl.num_programs(1) - 1)
    def _():
        o_ref[...] = (acc_ref[...]
                      + b_ref[...].astype(jnp.float32)).astype(o_ref.dtype)


def linear_pallas(x2d, w, b, *, max_resident_weight_bytes=None, force_tk=None):
    """y = x2d @ w + b with a row-tiled Pallas kernel (no HBM pad/crop copies)."""
    n, f_in = x2d.shape
    f_out = w.shape[1]
    dtype = x2d.dtype
    itemsize = jnp.dtype(dtype).itemsize
    b2 = b.reshape(1, f_out)

    capacity = _vmem_capacity_bytes()
    budget = _vmem_budget_bytes(capacity)
    if max_resident_weight_bytes is None:
        max_resident_weight_bytes = budget // 3

    weight_bytes = f_in * f_out * itemsize
    use_k_tiling = (force_tk is not None) or (weight_bytes > max_resident_weight_bytes)

    cost = pl.CostEstimate(
        flops=2 * n * f_in * f_out,
        transcendentals=0,
        bytes_accessed=itemsize * (n * f_in + f_in * f_out + f_out + n * f_out),
    )

    if not use_k_tiling:
        # ---- Common path: W and b resident in VMEM, streamed row tiles. ----
        fixed = (f_in * f_out + f_out) * itemsize        # single-buffered W + b
        per_row = 2 * (f_in + f_out) * itemsize          # dbl-buffered x / out
        tm = _choose_tm(n, fixed, per_row, itemsize, budget)
        grid = (pl.cdiv(n, tm),)
        # Pessimistic need (also covers the double-buffered-W fallback below).
        vmem_need = 2 * fixed + tm * per_row
        vmem_limit = _vmem_limit_bytes(vmem_need, capacity)

        def run(single_buffer_resident):
            pm = ({"pipeline_mode": pl.Buffered(1)}
                  if single_buffer_resident else {})
            return pl.pallas_call(
                _linear_kernel,
                out_shape=jax.ShapeDtypeStruct((n, f_out), dtype),
                grid_spec=pltpu.PrefetchScalarGridSpec(
                    num_scalar_prefetch=0,
                    grid=grid,
                    in_specs=[
                        pl.BlockSpec((tm, f_in), lambda i: (i, 0)),           # x
                        pl.BlockSpec((f_in, f_out), lambda i: (0, 0), **pm),  # W
                        pl.BlockSpec((1, f_out), lambda i: (0, 0), **pm),     # b
                    ],
                    out_specs=pl.BlockSpec((tm, f_out), lambda i: (i, 0)),
                ),
                compiler_params=pltpu.CompilerParams(
                    dimension_semantics=("parallel",),
                    vmem_limit_bytes=vmem_limit,
                ),
                cost_estimate=cost,
            )(x2d, w, b2)

        try:
            return run(True)
        except Exception:
            # If this JAX build rejects buffer_count=1, fall back to default
            # double-buffering (vmem_limit above already accounts for it).
            return run(False)

    # ---- Wide-layer path: stream W over a K grid axis, f32 accumulator. ----
    if force_tk is not None:
        tk = int(force_tk)
        f_in_p = _round_up(f_in, tk)
    else:
        f_in_p = _round_up(f_in, 128)
        tk = 128
        for cand in (1024, 512, 256):
            if f_in_p % cand == 0 and 2 * cand * f_out * itemsize <= budget // 3:
                tk = cand
                break

    # Zero-pad only the contraction dim (keeps the dot exact).  Only taken for
    # very wide layers where the matmul dominates this one-off copy.
    x_p = x2d if f_in_p == f_in else jnp.pad(x2d, ((0, 0), (0, f_in_p - f_in)))
    w_p = w if f_in_p == f_in else jnp.pad(w, ((0, f_in_p - f_in), (0, 0)))

    fixed = 2 * (tk * f_out + f_out) * itemsize          # dbl-buffered W slab + b
    per_row = 2 * (tk + f_out) * itemsize + 4 * f_out    # x/out tiles + f32 acc
    tm = _choose_tm(n, fixed, per_row, itemsize, budget)
    grid = (pl.cdiv(n, tm), f_in_p // tk)
    vmem_need = fixed + tm * per_row
    vmem_limit = _vmem_limit_bytes(vmem_need, capacity)

    return pl.pallas_call(
        _linear_kernel_ktiled,
        out_shape=jax.ShapeDtypeStruct((n, f_out), dtype),
        grid_spec=pltpu.PrefetchScalarGridSpec(
            num_scalar_prefetch=0,
            grid=grid,
            in_specs=[
                pl.BlockSpec((tm, tk), lambda i, k: (i, k)),      # x tile
                pl.BlockSpec((tk, f_out), lambda i, k: (k, 0)),   # W k-slab
                pl.BlockSpec((1, f_out), lambda i, k: (0, 0)),    # bias
            ],
            out_specs=pl.BlockSpec((tm, f_out), lambda i, k: (i, 0)),
            scratch_shapes=[pltpu.VMEM((tm, f_out), jnp.float32)],
        ),
        compiler_params=pltpu.CompilerParams(
            dimension_semantics=("parallel", "arbitrary"),
            vmem_limit_bytes=vmem_limit,
        ),
        cost_estimate=cost,
    )(x_p, w_p, b2)


def time_distributed(x, w, b, batch_first=False):
    """JAX/Pallas equivalent of TimeDistributed(Linear(...)).forward(x)."""
    if x.ndim <= 2:
        x2 = x.reshape(1, -1) if x.ndim == 1 else x
        y = linear_pallas(x2, w, b)
        return y.reshape(-1) if x.ndim == 1 else y
    # x.contiguous().view(-1, x.size(-1))
    x2 = x.reshape(-1, x.shape[-1])
    y = linear_pallas(x2, w, b)
    if batch_first:
        # y.contiguous().view(x.size(0), -1, y.size(-1))
        return y.reshape(x.shape[0], -1, y.shape[-1])
    else:
        # y.view(-1, x.size(1), y.size(-1))
        return y.reshape(-1, x.shape[1], y.shape[-1])


if __name__ == "__main__":
    key = jax.random.PRNGKey(0)
    k_x, k_w, k_b, k_x2, k_w2 = jax.random.split(key, 5)

    T, B, F_IN, F_OUT = 8, 2, 32, 64  # seq=8, batch=2, hidden=32 -> out=64

    # Deterministic synthetic parameters for the wrapped Linear module.
    w = jax.random.normal(k_w, (F_IN, F_OUT), dtype=jnp.float32) * 0.05
    b = jax.random.normal(k_b, (F_OUT,), dtype=jnp.float32)

    # Time-major input (batch_first=False), matching the PyTorch default.
    x = jax.random.normal(k_x, (T, B, F_IN), dtype=jnp.float32)

    y = jax.block_until_ready(time_distributed(x, w, b, batch_first=False))
    y_ref = (x.reshape(-1, F_IN) @ w + b[None, :]).reshape(-1, B, F_OUT)
    assert y.shape == (T, B, F_OUT), y.shape
    assert jnp.allclose(y, y_ref, atol=1e-5, rtol=1e-5)

    # len(x.size()) <= 2 fast path.
    y2d = jax.block_until_ready(time_distributed(x[0], w, b))
    assert jnp.allclose(y2d, x[0] @ w + b[None, :], atol=1e-5, rtol=1e-5)

    # batch_first=True path.
    x_bf = jnp.transpose(x, (1, 0, 2))  # (B, T, F)
    y_bf = jax.block_until_ready(time_distributed(x_bf, w, b, batch_first=True))
    y_bf_ref = (x_bf.reshape(-1, F_IN) @ w + b[None, :]).reshape(B, T, F_OUT)
    assert y_bf.shape == (B, T, F_OUT)
    assert jnp.allclose(y_bf, y_bf_ref, atol=1e-5, rtol=1e-5)

    # Ragged row count (n not a multiple of 8) -> full-dim single row block.
    x_rag = jax.random.normal(k_x2, (5, 3, F_IN), dtype=jnp.float32)
    y_rag = jax.block_until_ready(time_distributed(x_rag, w, b))
    y_rag_ref = (x_rag.reshape(-1, F_IN) @ w + b[None, :]).reshape(-1, 3, F_OUT)
    assert y_rag.shape == (5, 3, F_OUT)
    assert jnp.allclose(y_rag, y_rag_ref, atol=1e-5, rtol=1e-5)

    # Wide-layer K-tiled path, forced at small size so both paths are tested.
    F_IN_WIDE = 256
    w_wide = jax.random.normal(k_w2, (F_IN_WIDE, F_OUT), dtype=jnp.float32) * 0.02
    x_wide = jax.random.normal(k_x, (T, B, F_IN_WIDE), dtype=jnp.float32)
    x2_wide = x_wide.reshape(-1, F_IN_WIDE)
    y_wide = jax.block_until_ready(
        linear_pallas(x2_wide, w_wide, b,
                      max_resident_weight_bytes=1, force_tk=128))
    y_wide_ref = x2_wide @ w_wide + b[None, :]
    assert jnp.allclose(y_wide, y_wide_ref, atol=1e-3, rtol=1e-3)

    print("KERNEL_OK")
</pallas_src>

<mosaic_0001>
module attributes {stable_mosaic.version = 11 : i64} {
  func.func @_linear_kernel(%arg0: i32, %arg1: memref<16x32xf32, #tpu.memory_space<vmem>>, %arg2: memref<32x64xf32, #tpu.memory_space<vmem>>, %arg3: memref<1x64xf32, #tpu.memory_space<vmem>>, %arg4: memref<16x64xf32, #tpu.memory_space<vmem>>) attributes {dimension_semantics = [#tpu.dimension_semantics<parallel>], iteration_bounds = array<i64: 1>, scalar_prefetch = 0 : i64, scratch_operands = 0 : i64, tpu.core_type = #tpu.core_type<tc>, window_params = [{transform_indices = @transform_0, window_bounds = array<i64: 16, 32>}, {pipeline_mode = #tpu.pipeline_mode<synchronous>, transform_indices = @transform_1, window_bounds = array<i64: 32, 64>}, {pipeline_mode = #tpu.pipeline_mode<synchronous>, transform_indices = @transform_2, window_bounds = array<i64: 1, 64>}, {transform_indices = @transform_3, window_bounds = array<i64: 16, 64>}]} {
    %c0 = arith.constant 0 : index
    %c0_0 = arith.constant 0 : index
    %0 = vector.load %arg1[%c0, %c0_0] : memref<16x32xf32, #tpu.memory_space<vmem>>, vector<16x32xf32>
    %c0_1 = arith.constant 0 : index
    %c0_2 = arith.constant 0 : index
    %1 = vector.load %arg2[%c0_1, %c0_2] : memref<32x64xf32, #tpu.memory_space<vmem>>, vector<32x64xf32>
    %cst = arith.constant dense<0.000000e+00> : vector<16x64xf32>
    %2 = tpu.matmul %0, %1, %cst {dimension_numbers = #tpu.dot_dimension_numbers<[1], [0], [0], [1], [0, 0, 1, 1], [], []>} : vector<16x32xf32>, vector<32x64xf32>, vector<16x64xf32> -> vector<16x64xf32>
    %c0_3 = arith.constant 0 : index
    %c0_4 = arith.constant 0 : index
    %3 = vector.load %arg3[%c0_3, %c0_4] : memref<1x64xf32, #tpu.memory_space<vmem>>, vector<1x64xf32>
    %4 = vector.broadcast %3 : vector<1x64xf32> to vector<16x64xf32>
    %5 = arith.addf %2, %4 : vector<16x64xf32>
    %c0_5 = arith.constant 0 : index
    %c0_6 = arith.constant 0 : index
    %6 = vector.load %arg4[%c0_5, %c0_6] : memref<16x64xf32, #tpu.memory_space<vmem>>, vector<16x64xf32>
    tpu.vector_store %arg4[%c0_5, %c0_6], %5 {strides = array<i32>} : memref<16x64xf32, #tpu.memory_space<vmem>>, vector<16x64xf32>,
    return
  }
  func.func @transform_0(%arg0: i32) -> (i32, i32) {
    %c0_i32 = arith.constant 0 : i32
    %c0_i32_0 = arith.constant 0 : i32
    return %arg0, %c0_i32 : i32, i32
  }
  func.func @transform_1(%arg0: i32) -> (i32, i32) {
    %c0_i32 = arith.constant 0 : i32
    %c0_i32_0 = arith.constant 0 : i32
    %c0_i32_1 = arith.constant 0 : i32
    return %c0_i32, %c0_i32_0 : i32, i32
  }
  func.func @transform_2(%arg0: i32) -> (i32, i32) {
    %c0_i32 = arith.constant 0 : i32
    %c0_i32_0 = arith.constant 0 : i32
    %c0_i32_1 = arith.constant 0 : i32
    return %c0_i32, %c0_i32_0 : i32, i32
  }
  func.func @transform_3(%arg0: i32) -> (i32, i32) {
    %c0_i32 = arith.constant 0 : i32
    %c0_i32_0 = arith.constant 0 : i32
    return %arg0, %c0_i32 : i32, i32
  }
}

module attributes {stable_mosaic.version = 11 : i64} {
  func.func @_linear_kernel(%arg0: i32, %arg1: memref<16x32xf32, #tpu.memory_space<vmem>>, %arg2: memref<32x64xf32, #tpu.memory_space<vmem>>, %arg3: memref<1x64xf32, #tpu.memory_space<vmem>>, %arg4: memref<16x64xf32, #tpu.memory_space<vmem>>) attributes {dimension_semantics = [#tpu.dimension_semantics<parallel>], iteration_bounds = array<i64: 1>, scalar_prefetch = 0 : i64, scratch_operands = 0 : i64, tpu.core_type = #tpu.core_type<tc>, window_params = [{transform_indices = @transform_0, window_bounds = array<i64: 16, 32>}, {pipeline_mode = #tpu.pipeline_mode<synchronous>, transform_indices = @transform_1, window_bounds = array<i64: 32, 64>}, {pipeline_mode = #tpu.pipeline_mode<synchronous>, transform_indices = @transform_2, window_bounds = array<i64: 1, 64>}, {transform_indices = @transform_3, window_bounds = array<i64: 16, 64>}]} {
    %c0 = arith.constant 0 : index
    %c0_0 = arith.constant 0 : index
    %0 = vector.load %arg1[%c0, %c0_0] : memref<16x32xf32, #tpu.memory_space<vmem>>, vector<16x32xf32>
    %c0_1 = arith.constant 0 : index
    %c0_2 = arith.constant 0 : index
    %1 = vector.load %arg2[%c0_1, %c0_2] : memref<32x64xf32, #tpu.memory_space<vmem>>, vector<32x64xf32>
    %cst = arith.constant dense<0.000000e+00> : vector<16x64xf32>
    %2 = tpu.matmul %0, %1, %cst {dimension_numbers = #tpu.dot_dimension_numbers<[1], [0], [0], [1], [0, 0, 1, 1], [], []>} : vector<16x32xf32>, vector<32x64xf32>, vector<16x64xf32> -> vector<16x64xf32>
    %c0_3 = arith.constant 0 : index
    %c0_4 = arith.constant 0 : index
    %3 = vector.load %arg3[%c0_3, %c0_4] : memref<1x64xf32, #tpu.memory_space<vmem>>, vector<1x64xf32>
    %4 = vector.broadcast %3 : vector<1x64xf32> to vector<16x64xf32>
    %5 = arith.addf %2, %4 : vector<16x64xf32>
    %c0_5 = arith.constant 0 : index
    %c0_6 = arith.constant 0 : index
    %6 = vector.load %arg4[%c0_5, %c0_6] : memref<16x64xf32, #tpu.memory_space<vmem>>, vector<16x64xf32>
    tpu.vector_store %arg4[%c0_5, %c0_6], %5 {strides = array<i32>} : memref<16x64xf32, #tpu.memory_space<vmem>>, vector<16x64xf32>,
    return
  }
  func.func @transform_0(%arg0: i32) -> (i32, i32) {
    %c0_i32 = arith.constant 0 : i32
    %c0_i32_0 = arith.constant 0 : i32
    return %arg0, %c0_i32 : i32, i32
  }
  func.func @transform_1(%arg0: i32) -> (i32, i32) {
    %c0_i32 = arith.constant 0 : i32
    %c0_i32_0 = arith.constant 0 : i32
    %c0_i32_1 = arith.constant 0 : i32
    return %c0_i32, %c0_i32_0 : i32, i32
  }
  func.func @transform_2(%arg0: i32) -> (i32, i32) {
    %c0_i32 = arith.constant 0 : i32
    %c0_i32_0 = arith.constant 0 : i32
    %c0_i32_1 = arith.constant 0 : i32
    return %c0_i32, %c0_i32_0 : i32, i32
  }
  func.func @transform_3(%arg0: i32) -> (i32, i32) {
    %c0_i32 = arith.constant 0 : i32
    %c0_i32_0 = arith.constant 0 : i32
    return %arg0, %c0_i32 : i32, i32
  }
}

</mosaic_0001>

<bundles_post_ra>
// kernel: tpu_custom_call.1
= control target key start
LH: loop header
LB: loop body
LE: loop exit
PB: predicated region body
PF: predicated region fallthrough
CT: control target
= control target key end

     0   :  { %8 = vsyncpa [#allocation3], 0  ;;  %s337_s0 = inlined_call_operand.hbm [shape: f32[16,32], index: 0, kind: input, shape index: {}]   ;;  %s338_s1 = inlined_call_operand.hbm [shape: f32[32,64], index: 1, kind: input, shape index: {}]   ;;  %s339_s2 = inlined_call_operand.vmem [shape: f32[1,64], index: 2, kind: input, shape index: {}]   ;;  %s340_s3 = inlined_call_operand.hbm [shape: f32[16,64], index: 3, kind: output, shape index: {}]  }
   0x1   :  { %9 = vsyncpa [#allocation6], 0 }
   0x2   :  { %10 = vsyncpa [#allocation4], 0  ;;  %s264_s12 = smov [#allocation2]   ;;  %s192_s16 = scalar_lea.hbm %s337_s0, 256 }
   0x3   :  { %s16_s13 = sshll.u32 %s264_s12, 4  ;;  %p193_p0 = scmp.ne.s32.totalorder %s337_s0, %s192_s16  ;;  %s17_s13 = int_to_ptr.vmem [resolvable:$true] %s16_s13 }
   0x4   :  { %p196_p1 = scmp.lt.u32.totalorder %s192_s16, %s337_s0 }
   0x6   :  { %p198_p2 = pnand %p196_p1, %p193_p0 }
   0x8   :  { %201 = shalt.err (!%p198_p2)
}
   0x9   :  { %s202_s21 = scalar_lea.vmem %s17_s13, 256  ;;  %p207_p4 = scmp.lt.s32.totalorder %s17_s13, %s17_s13 }
   0xa   :  { %p203_p3 = scmp.ne.s32.totalorder %s17_s13, %s202_s21  ;;  %p208_p5 = scmp.lt.s32.totalorder %s202_s21, %s202_s21 }
   0xc   :  { %p209_p6 = por %p208_p5, %p207_p4 }
   0xe   :  { %p210_p7 = pnand %p209_p6, %p203_p3 }
  0x10   :  { %213 = shalt.err (!%p210_p7)
}
  0x11   :  { %s265_s22 = smov 128   ;;  %s266_s23 = smov 8  }
  0x12   :  { %22 = dma.hbm_to_vmem [thread:$0]  %s337_s0, 256, %s17_s13, [#allocation3], %s265_s22, %s265_s22, %s266_s23  }
  0x13   :  { %s267_s26 = smov [#allocation5]   ;;  %s214_s30 = scalar_lea.hbm %s338_s1, 512 }
  0x14   :  { %s28_s27 = sshll.u32 %s267_s26, 4  ;;  %p215_p8 = scmp.ne.s32.totalorder %s338_s1, %s214_s30  ;;  %s29_s27 = int_to_ptr.vmem [resolvable:$true] %s28_s27 }
  0x15   :  { %p218_p9 = scmp.lt.u32.totalorder %s214_s30, %s338_s1 }
  0x17   :  { %p220_p10 = pnand %p218_p9, %p215_p8 }
  0x19   :  { %223 = shalt.err (!%p220_p10)
}
  0x1a   :  { %s224_s8 = scalar_lea.vmem %s29_s27, 512  ;;  %p229_p12 = scmp.lt.s32.totalorder %s29_s27, %s29_s27 }
  0x1b   :  { %p225_p11 = scmp.ne.s32.totalorder %s29_s27, %s224_s8  ;;  %p230_p13 = scmp.lt.s32.totalorder %s224_s8, %s224_s8 }
  0x1d   :  { %p231_p0 = por %p230_p13, %p229_p12 }
  0x1f   :  { %p232_p1 = pnand %p231_p0, %p225_p11 }
  0x21   :  { %235 = shalt.err (!%p232_p1)
}
  0x22   :  { %34 = dma.hbm_to_vmem [thread:$0]  %s338_s1, 512, %s29_s27, [#allocation6], %s265_s22, %s265_s22, %s266_s23  }
  0x23   :  { %258 = dma.done.wait [#allocation3], 256  }
  0x24   :  { %259 = vsyncadd [#allocation3], 4294967040 }
  0x25   :  { %260 = dma.done.wait [#allocation6], 512  }
  0x26   :  { %261 = vsyncadd [#allocation6], 4294966784  ;;  %vm56_vm0 = vcmask 261120   ;;  %v45_v0 = vld [vmem:[#allocation5] sm:$0xff]  ;;  %v46_v1 = vld [vmem:[#allocation5 + $0x8] sm:$0xff]  ;;  %s268_s11 = smov [#allocation7]  }
  0x27   :  { %v47_v2 = vld [vmem:[#allocation5 + $0x10] sm:$0xff]  ;;  %v179_v3 = vpack.c.bf16 %v46_v1, %v45_v0  ;;  %v48_v4 = vld [vmem:[#allocation5 + $0x18] sm:$0xff]  ;;  %s146_s12 = sshll.u32 %s268_s11, 4  ;;  %vm138_vm1 = vcmask 523264   ;;  %s147_s12 = int_to_ptr.vmem [resolvable:$true] %s146_s12 }
  0x28   :  { %v43_v5 = vld [vmem:[#allocation2] sm:$0xff]  ;;  %v183_v6 = vpack.c.bf16 %v48_v4, %v47_v2  ;;  %v44_v7 = vld [vmem:[#allocation2 + $0x8] sm:$0xff]  ;;  %s236_s13 = scalar_lea.vmem %s147_s12, 256  ;;  %p241_p3 = scmp.lt.s32.totalorder %s147_s12, %s147_s12 }
  0x29   :  { %176 = vmatprep.mubr.msk.f32.mxu0 %vm56_vm0, %v43_v5  ;;  %180 = vmatprep.subr.bf16.mxu0 %v179_v3  ;;  %v159_v8 = vld [vmem:[%s339_s2] ss:$0 sm:$0xff]  ;;  %p237_p2 = scmp.ne.s32.totalorder %s147_s12, %s236_s13  ;;  %p242_p4 = scmp.lt.s32.totalorder %s236_s13, %s236_s13 }
  0x2a   :  { %182 = vmatpush3.bf16.msra.mxu0 %v179_v3 }
  0x2b   :  { %184 = vmatprep.subr.bf16.mxu0 %v183_v6  ;;  %p243_p5 = por %p242_p4, %p241_p3 }
  0x2d   :  { %p244_p6 = pnand %p243_p5, %p237_p2 }
  0x2e   :  { %186 = vmatpush3.bf16.msra.mxu0 %v183_v6 }
  0x31   :  { %177 = vmatmul.mubr.msk.f32.vlgmr.msra.gmra.mrb[0].mxu0 %vm56_vm0, %v44_v7 }
 0x104   :  { %v178_v9 = vpop.f32.mrb[0].mxu0 }
 0x105   :  { %v135_v10 = vadd.f32 %v178_v9, %v159_v8  ;;  %v129_v11 = vpop.f32.mrb[1].mxu0 }
 0x106   :  { %v130_v12 = vadd.f32 %v159_v8, %v129_v11 }
 0x107   :  { %140 = vst.msk [vmem:[#allocation7 + $0x8] sm:$0xff] %vm138_vm1, %v135_v10 }
 0x108   :  { %139 = vst.msk [vmem:[#allocation7] sm:$0xff] %vm138_vm1, %v130_v12 }
 0x109   :  { %247 = shalt.err (!%p244_p6)
}
 0x10a   :  { %s248_s2 = scalar_lea.hbm %s340_s3, 256 }
 0x10b   :  { %p249_p7 = scmp.ne.s32.totalorder %s340_s3, %s248_s2  ;;  %p252_p8 = scmp.lt.u32.totalorder %s248_s2, %s340_s3 }
 0x10d   :  { %p254_p9 = pnand %p252_p8, %p249_p7 }
 0x10f   :  { %257 = shalt.err (!%p254_p9)
}
 0x110   :  { %152 = dma.vmem_to_hbm [thread:$0]  %s147_s12, 256, %s340_s3, [#allocation4], %s265_s22, %s265_s22, %s266_s23  }
 0x111   :  { %262 = dma.done.wait [#allocation4], 256  }
 0x112   :  { %263 = vsyncadd [#allocation4], 4294967040 }
 0x113   :  { %156 = vsyncpa [#allocation3], 1 }
 0x114   :  { %157 = vsyncpa [#allocation6], 1 }
 0x115   :  { %158 = vsyncpa [#allocation4], 1 }

// kernel: tpu_custom_call.1
= control target key start
LH: loop header
LB: loop body
LE: loop exit
PB: predicated region body
PF: predicated region fallthrough
CT: control target
= control target key end

     0   :  { %8 = vsyncpa [#allocation3], 0  ;;  %s337_s0 = inlined_call_operand.hbm [shape: f32[16,32], index: 0, kind: input, shape index: {}]   ;;  %s338_s1 = inlined_call_operand.hbm [shape: f32[32,64], index: 1, kind: input, shape index: {}]   ;;  %s339_s2 = inlined_call_operand.vmem [shape: f32[1,64], index: 2, kind: input, shape index: {}]   ;;  %s340_s3 = inlined_call_operand.hbm [shape: f32[16,64], index: 3, kind: output, shape index: {}]  }
   0x1   :  { %9 = vsyncpa [#allocation6], 0 }
   0x2   :  { %10 = vsyncpa [#allocation4], 0  ;;  %s264_s12 = smov [#allocation2]   ;;  %s192_s16 = scalar_lea.hbm %s337_s0, 256 }
   0x3   :  { %s16_s13 = sshll.u32 %s264_s12, 4  ;;  %p193_p0 = scmp.ne.s32.totalorder %s337_s0, %s192_s16  ;;  %s17_s13 = int_to_ptr.vmem [resolvable:$true] %s16_s13 }
   0x4   :  { %p196_p1 = scmp.lt.u32.totalorder %s192_s16, %s337_s0 }
   0x6   :  { %p198_p2 = pnand %p196_p1, %p193_p0 }
   0x8   :  { %201 = shalt.err (!%p198_p2)
}
   0x9   :  { %s202_s21 = scalar_lea.vmem %s17_s13, 256  ;;  %p207_p4 = scmp.lt.s32.totalorder %s17_s13, %s17_s13 }
   0xa   :  { %p203_p3 = scmp.ne.s32.totalorder %s17_s13, %s202_s21  ;;  %p208_p5 = scmp.lt.s32.totalorder %s202_s21, %s202_s21 }
   0xc   :  { %p209_p6 = por %p208_p5, %p207_p4 }
   0xe   :  { %p210_p7 = pnand %p209_p6, %p203_p3 }
  0x10   :  { %213 = shalt.err (!%p210_p7)
}
  0x11   :  { %s265_s22 = smov 128   ;;  %s266_s23 = smov 8  }
  0x12   :  { %22 = dma.hbm_to_vmem [thread:$0]  %s337_s0, 256, %s17_s13, [#allocation3], %s265_s22, %s265_s22, %s266_s23  }
  0x13   :  { %s267_s26 = smov [#allocation5]   ;;  %s214_s30 = scalar_lea.hbm %s338_s1, 512 }
  0x14   :  { %s28_s27 = sshll.u32 %s267_s26, 4  ;;  %p215_p8 = scmp.ne.s32.totalorder %s338_s1, %s214_s30  ;;  %s29_s27 = int_to_ptr.vmem [resolvable:$true] %s28_s27 }
  0x15   :  { %p218_p9 = scmp.lt.u32.totalorder %s214_s30, %s338_s1 }
  0x17   :  { %p220_p10 = pnand %p218_p9, %p215_p8 }
  0x19   :  { %223 = shalt.err (!%p220_p10)
}
  0x1a   :  { %s224_s8 = scalar_lea.vmem %s29_s27, 512  ;;  %p229_p12 = scmp.lt.s32.totalorder %s29_s27, %s29_s27 }
  0x1b   :  { %p225_p11 = scmp.ne.s32.totalorder %s29_s27, %s224_s8  ;;  %p230_p13 = scmp.lt.s32.totalorder %s224_s8, %s224_s8 }
  0x1d   :  { %p231_p0 = por %p230_p13, %p229_p12 }
  0x1f   :  { %p232_p1 = pnand %p231_p0, %p225_p11 }
  0x21   :  { %235 = shalt.err (!%p232_p1)
}
  0x22   :  { %34 = dma.hbm_to_vmem [thread:$0]  %s338_s1, 512, %s29_s27, [#allocation6], %s265_s22, %s265_s22, %s266_s23  }
  0x23   :  { %258 = dma.done.wait [#allocation3], 256  }
  0x24   :  { %259 = vsyncadd [#allocation3], 4294967040 }
  0x25   :  { %260 = dma.done.wait [#allocation6], 512  }
  0x26   :  { %261 = vsyncadd [#allocation6], 4294966784  ;;  %vm56_vm0 = vcmask 261120   ;;  %v45_v0 = vld [vmem:[#allocation5] sm:$0xff]  ;;  %v46_v1 = vld [vmem:[#allocation5 + $0x8] sm:$0xff]  ;;  %s268_s11 = smov [#allocation7]  }
  0x27   :  { %v47_v2 = vld [vmem:[#allocation5 + $0x10] sm:$0xff]  ;;  %v179_v3 = vpack.c.bf16 %v46_v1, %v45_v0  ;;  %v48_v4 = vld [vmem:[#allocation5 + $0x18] sm:$0xff]  ;;  %s146_s12 = sshll.u32 %s268_s11, 4  ;;  %vm138_vm1 = vcmask 523264   ;;  %s147_s12 = int_to_ptr.vmem [resolvable:$true] %s146_s12 }
  0x28   :  { %v43_v5 = vld [vmem:[#allocation2] sm:$0xff]  ;;  %v183_v6 = vpack.c.bf16 %v48_v4, %v47_v2  ;;  %v44_v7 = vld [vmem:[#allocation2 + $0x8] sm:$0xff]  ;;  %s236_s13 = scalar_lea.vmem %s147_s12, 256  ;;  %p241_p3 = scmp.lt.s32.totalorder %s147_s12, %s147_s12 }
  0x29   :  { %176 = vmatprep.mubr.msk.f32.mxu0 %vm56_vm0, %v43_v5  ;;  %180 = vmatprep.subr.bf16.mxu0 %v179_v3  ;;  %v159_v8 = vld [vmem:[%s339_s2] ss:$0 sm:$0xff]  ;;  %p237_p2 = scmp.ne.s32.totalorder %s147_s12, %s236_s13  ;;  %p242_p4 = scmp.lt.s32.totalorder %s236_s13, %s236_s13 }
  0x2a   :  { %182 = vmatpush3.bf16.msra.mxu0 %v179_v3 }
  0x2b   :  { %184 = vmatprep.subr.bf16.mxu0 %v183_v6  ;;  %p243_p5 = por %p242_p4, %p241_p3 }
  0x2d   :  { %p244_p6 = pnand %p243_p5, %p237_p2 }
  0x2e   :  { %186 = vmatpush3.bf16.msra.mxu0 %v183_v6 }
  0x31   :  { %177 = vmatmul.mubr.msk.f32.vlgmr.msra.gmra.mrb[0].mxu0 %vm56_vm0, %v44_v7 }
 0x104   :  { %v178_v9 = vpop.f32.mrb[0].mxu0 }
 0x105   :  { %v135_v10 = vadd.f32 %v178_v9, %v159_v8  ;;  %v129_v11 = vpop.f32.mrb[1].mxu0 }
 0x106   :  { %v130_v12 = vadd.f32 %v159_v8, %v129_v11 }
 0x107   :  { %140 = vst.msk [vmem:[#allocation7 + $0x8] sm:$0xff] %vm138_vm1, %v135_v10 }
 0x108   :  { %139 = vst.msk [vmem:[#allocation7] sm:$0xff] %vm138_vm1, %v130_v12 }
 0x109   :  { %247 = shalt.err (!%p244_p6)
}
 0x10a   :  { %s248_s2 = scalar_lea.hbm %s340_s3, 256 }
 0x10b   :  { %p249_p7 = scmp.ne.s32.totalorder %s340_s3, %s248_s2  ;;  %p252_p8 = scmp.lt.u32.totalorder %s248_s2, %s340_s3 }
 0x10d   :  { %p254_p9 = pnand %p252_p8, %p249_p7 }
 0x10f   :  { %257 = shalt.err (!%p254_p9)
}
 0x110   :  { %152 = dma.vmem_to_hbm [thread:$0]  %s147_s12, 256, %s340_s3, [#allocation4], %s265_s22, %s265_s22, %s266_s23  }
 0x111   :  { %262 = dma.done.wait [#allocation4], 256  }
 0x112   :  { %263 = vsyncadd [#allocation4], 4294967040 }
 0x113   :  { %156 = vsyncpa [#allocation3], 1 }
 0x114   :  { %157 = vsyncpa [#allocation6], 1 }
 0x115   :  { %158 = vsyncpa [#allocation4], 1 }

</bundles_post_ra>
